<compile_context>
chip_gen: v7x
topology: tpu7x:2x2x1
jax: 0.10.0
libtpu: 0.0.40
codegen_flags: <defaults>
</compile_context>

<pallas_src>
import functools

import jax
import jax.numpy as jnp
from jax.experimental import pallas as pl
from jax.experimental.pallas import tpu as pltpu

NEG_BIG = -1e30  # padded-lane bias; exp(NEG_BIG - max) == 0 exactly in f32


def netz_seq_kernel(
    x_ref,        # (B, I)        current time-step input (squeezed T dim)
    h0_ref,       # (B, H)        initial hidden state (resident)
    w1x_ref,      # (I, H+O)      fused [input_to_hidden | input_to_output], input rows
    w1h_ref,      # (H, H+O)      fused [input_to_hidden | input_to_output], hidden rows
    b1_ref,       # (1, H+O)      fused bias (f32)
    w2_ref,       # (H+O, O_PAD)  output_to_output, lane-padded with zeros
    b2_ref,       # (1, O_PAD)    bias, padded lanes = NEG_BIG (f32)
    out_ref,      # (B, O_PAD)    per-step log-probs (squeezed T dim)
    hid_ref,      # (B, H)        final hidden state
    h_acc,        # VMEM scratch (B, H) f32 — hidden carried across time steps
):
    t = pl.program_id(0)
    H = h0_ref.shape[1]
    cdt = w1x_ref.dtype  # matmul operand dtype (bf16)

    @pl.when(t == 0)
    def _():
        h_acc[...] = h0_ref[...].astype(jnp.float32)

    x = x_ref[...].astype(cdt)      # (B, I)
    h = h_acc[...].astype(cdt)      # (B, H)

    # stage 1: [hidden_new | output] = cat(x, h) @ W1 + b1   (cat realized as split matmul)
    s1 = (
        jnp.dot(x, w1x_ref[...], preferred_element_type=jnp.float32)
        + jnp.dot(h, w1h_ref[...], preferred_element_type=jnp.float32)
        + b1_ref[...]
    )                                # (B, H+O) f32

    # stage 2: logits = cat(hidden_new, output) @ W2 + b2  — s1 IS that concatenation.
    logits = (
        jnp.dot(s1.astype(cdt), w2_ref[...], preferred_element_type=jnp.float32)
        + b2_ref[...]
    )                                # (B, O_PAD) f32; padded lanes == NEG_BIG

    # Dropout(0.1) in eval mode -> identity.

    # LogSoftmax over the feature axis (padded lanes contribute exp(...) == 0).
    m = jnp.max(logits, axis=1, keepdims=True)
    shifted = logits - m
    lse = jnp.log(jnp.sum(jnp.exp(shifted), axis=1, keepdims=True))
    out_ref[...] = (shifted - lse).astype(out_ref.dtype)

    # recurrence: new hidden = first H columns of stage-1 result
    h_acc[...] = s1[:, :H]

    @pl.when(t == pl.num_programs(0) - 1)
    def _():
        hid_ref[...] = h_acc[...].astype(hid_ref.dtype)


@functools.partial(jax.jit, static_argnames=("n_outputs",))
def netz_forward(x_seq, h0, params, *, n_outputs):
    """x_seq: (T, B, I), h0: (B, H).

    Returns (log_probs (T, B, n_outputs), final_hidden (B, H)).
    Each time step computes exactly the Netz.forward() of the PyTorch module.
    """
    T, B, I = x_seq.shape
    H = h0.shape[1]
    HO = params["w1x"].shape[1]      # H + O
    OP = params["w2"].shape[1]       # O padded to a multiple of 128 lanes

    grid_spec = pltpu.PrefetchScalarGridSpec(
        num_scalar_prefetch=0,
        grid=(T,),
        in_specs=[
            pl.BlockSpec((None, B, I), lambda t: (t, 0, 0)),  # x[t]
            pl.BlockSpec((B, H), lambda t: (0, 0)),           # h0 (resident)
            pl.BlockSpec((I, HO), lambda t: (0, 0)),          # weights resident in VMEM
            pl.BlockSpec((H, HO), lambda t: (0, 0)),
            pl.BlockSpec((1, HO), lambda t: (0, 0)),
            pl.BlockSpec((HO, OP), lambda t: (0, 0)),
            pl.BlockSpec((1, OP), lambda t: (0, 0)),
        ],
        out_specs=(
            pl.BlockSpec((None, B, OP), lambda t: (t, 0, 0)),  # per-step log-probs
            pl.BlockSpec((B, H), lambda t: (0, 0)),            # final hidden
        ),
        scratch_shapes=[pltpu.VMEM((B, H), jnp.float32)],
    )

    out_pad, h_last = pl.pallas_call(
        netz_seq_kernel,
        out_shape=(
            jax.ShapeDtypeStruct((T, B, OP), jnp.float32),
            jax.ShapeDtypeStruct((B, H), jnp.float32),
        ),
        grid_spec=grid_spec,
        compiler_params=pltpu.CompilerParams(
            dimension_semantics=("arbitrary",),       # time axis is a true recurrence
            vmem_limit_bytes=32 * 1024 * 1024,        # explicit budget (v7x-safe)
        ),
    )(
        x_seq, h0,
        params["w1x"], params["w1h"], params["b1"],
        params["w2"], params["b2"],
    )

    return out_pad[:, :, :n_outputs], h_last


def init_params(key, inputs, hiddens, outputs, weight_dtype=jnp.bfloat16):
    """Deterministic init mimicking nn.Linear's U(-1/sqrt(fan_in), 1/sqrt(fan_in)).

    Weights are stored pre-transposed as (in_features, out_features), with the
    two stage-1 Linears fused column-wise and the stage-2 Linear lane-padded.
    """
    ks = jax.random.split(key, 6)

    def uni(k, shape, fan_in):
        bound = 1.0 / jnp.sqrt(jnp.float32(fan_in))
        return jax.random.uniform(k, shape, jnp.float32, -bound, bound)

    fan1 = inputs + hiddens           # input_to_hidden / input_to_output fan-in
    fan2 = hiddens + outputs          # output_to_output fan-in

    w_ih = uni(ks[0], (fan1, hiddens), fan1)      # (I+H, H)
    b_ih = uni(ks[1], (1, hiddens), fan1)
    w_io = uni(ks[2], (fan1, outputs), fan1)      # (I+H, O)
    b_io = uni(ks[3], (1, outputs), fan1)
    w_oo = uni(ks[4], (fan2, outputs), fan2)      # (H+O, O)
    b_oo = uni(ks[5], (1, outputs), fan2)

    # stage 1 fusion: columns ordered [hidden | output]
    w1 = jnp.concatenate([w_ih, w_io], axis=1)    # (I+H, H+O)
    b1 = jnp.concatenate([b_ih, b_io], axis=1)    # (1, H+O)

    # stage 2: lane-pad O to a multiple of 128; padded bias lanes -> NEG_BIG
    o_pad = max(128, ((outputs + 127) // 128) * 128)
    w2 = jnp.zeros((fan2, o_pad), jnp.float32).at[:, :outputs].set(w_oo)
    b2 = jnp.full((1, o_pad), NEG_BIG, jnp.float32).at[:, :outputs].set(b_oo)

    return {
        "w1x": w1[:inputs].astype(weight_dtype),   # (I, H+O)
        "w1h": w1[inputs:].astype(weight_dtype),   # (H, H+O)
        "b1": b1,                                  # f32
        "w2": w2.astype(weight_dtype),             # (H+O, O_PAD)
        "b2": b2,                                  # f32
    }


def netz_reference(x_seq, h0, params, n_outputs):
    """Pure-JAX reference with identical dtype handling (bf16 matmuls, f32 accum)."""
    w1x, w1h, b1 = params["w1x"], params["w1h"], params["b1"]
    w2, b2 = params["w2"], params["b2"]
    H = h0.shape[1]
    cdt = w1x.dtype

    def step(h, x):
        s1 = (
            jnp.dot(x.astype(cdt), w1x, preferred_element_type=jnp.float32)
            + jnp.dot(h.astype(cdt), w1h, preferred_element_type=jnp.float32)
            + b1
        )
        logits = jnp.dot(s1.astype(cdt), w2, preferred_element_type=jnp.float32) + b2
        logp = jax.nn.log_softmax(logits[:, :n_outputs], axis=1)
        return s1[:, :H], logp

    h_last, logps = jax.lax.scan(step, h0, x_seq)
    return logps, h_last


if __name__ == "__main__":
    T, B, INPUTS, HIDDENS, OUTPUTS = 8, 2, 16, 32, 8

    key = jax.random.PRNGKey(0)
    k_x, k_p = jax.random.split(key)

    x_seq = jax.random.normal(k_x, (T, B, INPUTS), jnp.float32)
    h0 = jnp.zeros((B, HIDDENS), jnp.float32)          # Netz.initHidden(), batched
    params = init_params(k_p, INPUTS, HIDDENS, OUTPUTS)

    log_probs, h_last = netz_forward(x_seq, h0, params, n_outputs=OUTPUTS)
    jax.block_until_ready((log_probs, h_last))

    # correctness checks
    assert log_probs.shape == (T, B, OUTPUTS)
    assert h_last.shape == (B, HIDDENS)

    # log-softmax rows must sum (in prob space) to ~1
    row_sums = jnp.sum(jnp.exp(log_probs), axis=-1)
    assert bool(jnp.all(jnp.abs(row_sums - 1.0) < 1e-3))

    # match the pure-JAX reference recurrence
    ref_lp, ref_h = jax.jit(netz_reference, static_argnums=3)(x_seq, h0, params, OUTPUTS)
    assert bool(jnp.allclose(log_probs, ref_lp, atol=2e-2, rtol=2e-2))
    assert bool(jnp.allclose(h_last, ref_h, atol=2e-2, rtol=2e-2))

    print("KERNEL_OK")
</pallas_src>

<mosaic_0001>
module attributes {stable_mosaic.version = 11 : i64} {
  func.func @netz_seq_kernel(%arg0: i32, %arg1: memref<1x2x16xf32, #tpu.memory_space<vmem>>, %arg2: memref<2x32xf32, #tpu.memory_space<vmem>>, %arg3: memref<16x40xbf16, #tpu.memory_space<vmem>>, %arg4: memref<32x40xbf16, #tpu.memory_space<vmem>>, %arg5: memref<1x40xf32, #tpu.memory_space<vmem>>, %arg6: memref<40x128xbf16, #tpu.memory_space<vmem>>, %arg7: memref<1x128xf32, #tpu.memory_space<vmem>>, %arg8: memref<1x2x128xf32, #tpu.memory_space<vmem>>, %arg9: memref<2x32xf32, #tpu.memory_space<vmem>>, %arg10: memref<2x32xf32, #tpu.memory_space<vmem>>) attributes {dimension_semantics = [#tpu.dimension_semantics<arbitrary>], iteration_bounds = array<i64: 8>, scalar_prefetch = 0 : i64, scratch_operands = 1 : i64, tpu.core_type = #tpu.core_type<tc>, window_params = [{transform_indices = @transform_0, window_bounds = array<i64: 1, 2, 16>}, {pipeline_mode = #tpu.pipeline_mode<synchronous>, transform_indices = @transform_1, window_bounds = array<i64: 2, 32>}, {pipeline_mode = #tpu.pipeline_mode<synchronous>, transform_indices = @transform_2, window_bounds = array<i64: 16, 40>}, {pipeline_mode = #tpu.pipeline_mode<synchronous>, transform_indices = @transform_3, window_bounds = array<i64: 32, 40>}, {pipeline_mode = #tpu.pipeline_mode<synchronous>, transform_indices = @transform_4, window_bounds = array<i64: 1, 40>}, {pipeline_mode = #tpu.pipeline_mode<synchronous>, transform_indices = @transform_5, window_bounds = array<i64: 40, 128>}, {pipeline_mode = #tpu.pipeline_mode<synchronous>, transform_indices = @transform_6, window_bounds = array<i64: 1, 128>}, {transform_indices = @transform_7, window_bounds = array<i64: 1, 2, 128>}, {pipeline_mode = #tpu.pipeline_mode<synchronous>, transform_indices = @transform_8, window_bounds = array<i64: 2, 32>}]} {
    %c0_i32 = arith.constant 0 : i32
    %0 = arith.cmpi eq, %arg0, %c0_i32 : i32
    %1 = arith.extui %0 : i1 to i32
    %c0_i32_0 = arith.constant 0 : i32
    %2 = arith.cmpi ne, %1, %c0_i32_0 : i32
    scf.if %2 {
      %c0_25 = arith.constant 0 : index
      %c0_26 = arith.constant 0 : index
      %40 = vector.load %arg2[%c0_25, %c0_26] : memref<2x32xf32, #tpu.memory_space<vmem>>, vector<2x32xf32>
      %c0_27 = arith.constant 0 : index
      %c0_28 = arith.constant 0 : index
      %41 = vector.load %arg10[%c0_27, %c0_28] : memref<2x32xf32, #tpu.memory_space<vmem>>, vector<2x32xf32>
      tpu.vector_store %arg10[%c0_27, %c0_28], %40 {strides = array<i32>} : memref<2x32xf32, #tpu.memory_space<vmem>>, vector<2x32xf32>,
    } else {
    }
    %c0 = arith.constant 0 : index
    %c0_1 = arith.constant 0 : index
    %c0_2 = arith.constant 0 : index
    %3 = vector.load %arg1[%c0, %c0_1, %c0_2] : memref<1x2x16xf32, #tpu.memory_space<vmem>>, vector<1x2x16xf32>
    %4 = vector.shape_cast %3 : vector<1x2x16xf32> to vector<2x16xf32>
    %5 = arith.truncf %4 : vector<2x16xf32> to vector<2x16xbf16>
    %c0_3 = arith.constant 0 : index
    %c0_4 = arith.constant 0 : index
    %6 = vector.load %arg10[%c0_3, %c0_4] : memref<2x32xf32, #tpu.memory_space<vmem>>, vector<2x32xf32>
    %7 = arith.truncf %6 : vector<2x32xf32> to vector<2x32xbf16>
    %c0_5 = arith.constant 0 : index
    %c0_6 = arith.constant 0 : index
    %8 = vector.load %arg3[%c0_5, %c0_6] : memref<16x40xbf16, #tpu.memory_space<vmem>>, vector<16x40xbf16>
    %cst = arith.constant dense<0.000000e+00> : vector<2x40xf32>
    %9 = tpu.matmul %5, %8, %cst {dimension_numbers = #tpu.dot_dimension_numbers<[1], [0], [0], [1], [0, 0, 1, 1], [], []>} : vector<2x16xbf16>, vector<16x40xbf16>, vector<2x40xf32> -> vector<2x40xf32>
    %c0_7 = arith.constant 0 : index
    %c0_8 = arith.constant 0 : index
    %10 = vector.load %arg4[%c0_7, %c0_8] : memref<32x40xbf16, #tpu.memory_space<vmem>>, vector<32x40xbf16>
    %cst_9 = arith.constant dense<0.000000e+00> : vector<2x40xf32>
    %11 = tpu.matmul %7, %10, %cst_9 {dimension_numbers = #tpu.dot_dimension_numbers<[1], [0], [0], [1], [0, 0, 1, 1], [], []>} : vector<2x32xbf16>, vector<32x40xbf16>, vector<2x40xf32> -> vector<2x40xf32>
    %12 = arith.addf %9, %11 : vector<2x40xf32>
    %c0_10 = arith.constant 0 : index
    %c0_11 = arith.constant 0 : index
    %13 = vector.load %arg5[%c0_10, %c0_11] : memref<1x40xf32, #tpu.memory_space<vmem>>, vector<1x40xf32>
    %14 = vector.broadcast %13 : vector<1x40xf32> to vector<2x40xf32>
    %15 = arith.addf %12, %14 : vector<2x40xf32>
    %16 = arith.truncf %15 : vector<2x40xf32> to vector<2x40xbf16>
    %c0_12 = arith.constant 0 : index
    %c0_13 = arith.constant 0 : index
    %17 = vector.load %arg6[%c0_12, %c0_13] : memref<40x128xbf16, #tpu.memory_space<vmem>>, vector<40x128xbf16>
    %cst_14 = arith.constant dense<0.000000e+00> : vector<2x128xf32>
    %18 = tpu.matmul %16, %17, %cst_14 {dimension_numbers = #tpu.dot_dimension_numbers<[1], [0], [0], [1], [0, 0, 1, 1], [], []>} : vector<2x40xbf16>, vector<40x128xbf16>, vector<2x128xf32> -> vector<2x128xf32>
    %c0_15 = arith.constant 0 : index
    %c0_16 = arith.constant 0 : index
    %19 = vector.load %arg7[%c0_15, %c0_16] : memref<1x128xf32, #tpu.memory_space<vmem>>, vector<1x128xf32>
    %20 = vector.broadcast %19 : vector<1x128xf32> to vector<2x128xf32>
    %21 = arith.addf %18, %20 : vector<2x128xf32>
    %cst_17 = arith.constant dense<0xFF800000> : vector<2xf32>
    %22 = vector.multi_reduction <maximumf>, %21, %cst_17 [1] : vector<2x128xf32> to vector<2xf32>
    %23 = vector.shape_cast %22 : vector<2xf32> to vector<2x1xf32>
    %24 = vector.broadcast %23 : vector<2x1xf32> to vector<2x128xf32>
    %25 = arith.subf %21, %24 : vector<2x128xf32>
    %26 = math.exp %25 : vector<2x128xf32>
    %cst_18 = arith.constant dense<0.000000e+00> : vector<2xf32>
    %27 = vector.multi_reduction <add>, %26, %cst_18 [1] : vector<2x128xf32> to vector<2xf32>
    %28 = vector.shape_cast %27 : vector<2xf32> to vector<2x1xf32>
    %29 = math.log %28 : vector<2x1xf32>
    %30 = vector.broadcast %29 : vector<2x1xf32> to vector<2x128xf32>
    %31 = arith.subf %25, %30 : vector<2x128xf32>
    %c0_19 = arith.constant 0 : index
    %c0_20 = arith.constant 0 : index
    %c0_21 = arith.constant 0 : index
    %32 = vector.load %arg8[%c0_19, %c0_20, %c0_21] : memref<1x2x128xf32, #tpu.memory_space<vmem>>, vector<1x2x128xf32>
    %33 = vector.shape_cast %32 : vector<1x2x128xf32> to vector<2x128xf32>
    %34 = vector.shape_cast %31 : vector<2x128xf32> to vector<1x2x128xf32>
    tpu.vector_store %arg8[%c0_19, %c0_20, %c0_21], %34 {strides = array<i32>} : memref<1x2x128xf32, #tpu.memory_space<vmem>>, vector<1x2x128xf32>,
    %35 = vector.extract_strided_slice %15 {offsets = [0, 0], sizes = [2, 32], strides = [1, 1]} : vector<2x40xf32> to vector<2x32xf32>
    %c0_22 = arith.constant 0 : index
    %c0_23 = arith.constant 0 : index
    %36 = vector.load %arg10[%c0_22, %c0_23] : memref<2x32xf32, #tpu.memory_space<vmem>>, vector<2x32xf32>
    tpu.vector_store %arg10[%c0_22, %c0_23], %35 {strides = array<i32>} : memref<2x32xf32, #tpu.memory_space<vmem>>, vector<2x32xf32>,
    %c7_i32 = arith.constant 7 : i32
    %37 = arith.cmpi eq, %arg0, %c7_i32 : i32
    %38 = arith.extui %37 : i1 to i32
    %c0_i32_24 = arith.constant 0 : i32
    %39 = arith.cmpi ne, %38, %c0_i32_24 : i32
    scf.if %39 {
      %c0_25 = arith.constant 0 : index
      %c0_26 = arith.constant 0 : index
      %40 = vector.load %arg10[%c0_25, %c0_26] : memref<2x32xf32, #tpu.memory_space<vmem>>, vector<2x32xf32>
      %c0_27 = arith.constant 0 : index
      %c0_28 = arith.constant 0 : index
      %41 = vector.load %arg9[%c0_27, %c0_28] : memref<2x32xf32, #tpu.memory_space<vmem>>, vector<2x32xf32>
      tpu.vector_store %arg9[%c0_27, %c0_28], %40 {strides = array<i32>} : memref<2x32xf32, #tpu.memory_space<vmem>>, vector<2x32xf32>,
    } else {
    }
    return
  }
  func.func @transform_0(%arg0: i32) -> (i32, i32, i32) {
    %c0_i32 = arith.constant 0 : i32
    %c0_i32_0 = arith.constant 0 : i32
    %c0_i32_1 = arith.constant 0 : i32
    return %arg0, %c0_i32, %c0_i32_0 : i32, i32, i32
  }
  func.func @transform_1(%arg0: i32) -> (i32, i32) {
    %c0_i32 = arith.constant 0 : i32
    %c0_i32_0 = arith.constant 0 : i32
    %c0_i32_1 = arith.constant 0 : i32
    return %c0_i32, %c0_i32_0 : i32, i32
  }
  func.func @transform_2(%arg0: i32) -> (i32, i32) {
    %c0_i32 = arith.constant 0 : i32
    %c0_i32_0 = arith.constant 0 : i32
    %c0_i32_1 = arith.constant 0 : i32
    return %c0_i32, %c0_i32_0 : i32, i32
  }
  func.func @transform_3(%arg0: i32) -> (i32, i32) {
    %c0_i32 = arith.constant 0 : i32
    %c0_i32_0 = arith.constant 0 : i32
    %c0_i32_1 = arith.constant 0 : i32
    return %c0_i32, %c0_i32_0 : i32, i32
  }
  func.func @transform_4(%arg0: i32) -> (i32, i32) {
    %c0_i32 = arith.constant 0 : i32
    %c0_i32_0 = arith.constant 0 : i32
    %c0_i32_1 = arith.constant 0 : i32
    return %c0_i32, %c0_i32_0 : i32, i32
  }
  func.func @transform_5(%arg0: i32) -> (i32, i32) {
    %c0_i32 = arith.constant 0 : i32
    %c0_i32_0 = arith.constant 0 : i32
    %c0_i32_1 = arith.constant 0 : i32
    return %c0_i32, %c0_i32_0 : i32, i32
  }
  func.func @transform_6(%arg0: i32) -> (i32, i32) {
    %c0_i32 = arith.constant 0 : i32
    %c0_i32_0 = arith.constant 0 : i32
    %c0_i32_1 = arith.constant 0 : i32
    return %c0_i32, %c0_i32_0 : i32, i32
  }
  func.func @transform_7(%arg0: i32) -> (i32, i32, i32) {
    %c0_i32 = arith.constant 0 : i32
    %c0_i32_0 = arith.constant 0 : i32
    %c0_i32_1 = arith.constant 0 : i32
    return %arg0, %c0_i32, %c0_i32_0 : i32, i32, i32
  }
  func.func @transform_8(%arg0: i32) -> (i32, i32) {
    %c0_i32 = arith.constant 0 : i32
    %c0_i32_0 = arith.constant 0 : i32
    %c0_i32_1 = arith.constant 0 : i32
    return %c0_i32, %c0_i32_0 : i32, i32
  }
}

</mosaic_0001>

<bundles_post_ra>
// kernel: netz_forward.1
= control target key start
LH: loop header
LB: loop body
LE: loop exit
PB: predicated region body
PF: predicated region fallthrough
CT: control target
= control target key end

     0   :  { %s1556_s0 = inlined_call_operand.hbm [shape: f32[8,2,16], index: 0, kind: input, shape index: {}]   ;;  %s1557_s1 = inlined_call_operand.vmem [shape: f32[2,32], index: 1, kind: input, shape index: {}]   ;;  %s1558_s2 = inlined_call_operand.hbm [shape: bf16[16,40], index: 2, kind: input, shape index: {}]   ;;  %s1559_s3 = inlined_call_operand.hbm [shape: bf16[32,40], index: 3, kind: input, shape index: {}]   ;;  %s1560_s4 = inlined_call_operand.hbm [shape: f32[1,40], index: 4, kind: input, shape index: {}]   ;;  %s1561_s5 = inlined_call_operand.vmem [shape: bf16[40,128], index: 5, kind: input, shape index: {}]   ;;  %s1562_s6 = inlined_call_operand.hbm [shape: f32[1,128], index: 6, kind: input, shape index: {}]   ;;  %s1563_s7 = inlined_call_operand.hbm [shape: f32[8,2,128], index: 7, kind: output, shape index: {0}]   ;;  %s1564_s8 = inlined_call_operand.hbm [shape: f32[2,32], index: 8, kind: output, shape index: {1}]  }
   0x1   :  { %1569 = sst [smem:[#allocation20_spill]] %s1558_s2 }
   0x2   :  { %14 = vsyncpa [#allocation4], 0 }
   0x3   :  { %16 = vsyncpa [#allocation4 + $0x1], 0 }
   0x4   :  { %17 = vsyncpa [#allocation7], 0 }
   0x5   :  { %18 = vsyncpa [#allocation10], 0 }
   0x6   :  { %19 = vsyncpa [#allocation5], 0 }
   0x7   :  { %21 = vsyncpa [#allocation5 + $0x1], 0 }
   0x8   :  { %22 = vsyncpa [#allocation14], 0  ;;  %s1228_s27 = smov 0   ;;  %s1230_s28 = smov 0  }
   0x9   :  { %s1232_s29 = smov 0   ;;  %s1234_s30 = smov 0  }
   0xa LB: > { %s1172_s9 = smov [#allocation6]   ;;  %s1249_s11 = sadd.s32 4294967295, %s1170_s30   ;;  %s1170_s30 = sphi %s1234_s30, %s1595_s30   ;;  %s1166_s29 = sphi %s1232_s29, %s1594_s29   ;;  %s1162_s28 = sphi %s1230_s28, %s1593_s28   ;;  %s1158_s27 = sphi %s1228_s27, %s1592_s27  }
   0xb   : > { %s247_s10 = sshll.u32 %s1172_s9, 4  ;;  %p749_p0 = scmp.ge.s32.totalorder %s1170_s30, 1  ;;  %s1255_s10 = int_to_ptr.vmem [resolvable:$true] %s247_s10 }
   0xc   : > { %p1565_p1 = scmp.eq.s32.totalorder %s1249_s11, 0  ;;  %p232_p2 = scmp.lt.s32.totalorder %s1170_s30, 9 }
   0xd   : > { %s1173_s13 = smov [#allocation9]   ;;  %s1174_s16 = smov [#allocation8]  }
   0xe   : > { %p1257_p4 = pnand %p749_p0, %p232_p2  ;;  %s274_s14 = sshll.u32 %s1173_s13, 4  ;;  %s1269_s14 = int_to_ptr.vmem [resolvable:$true] %s274_s14 }
   0xf   : > { %s260_s17 = sshll.u32 %s1174_s16, 4  ;;  %s1572_s2 = sld [smem:[#allocation20_spill]]  ;;  %s1271_s17 = int_to_ptr.vmem [resolvable:$true] %s260_s17 }
  0x10   : > { %s1570_s12 = scalar_select %p1257_p4, 1, 0 }
  0x11   : > { %p840_p5 = pneg %p1257_p4 }
  0x13   : > { %p1265_p6 = pnand %p840_p5, %p1565_p1 }
  0x15   : > { %s924_s20 = scalar_lea.hbm %s1572_s2, 128  ;;  %p1281_p8 = pneg %p1265_p6 }
  0x16   : > { %p925_p7 = scmp.ne.s32.totalorder %s1572_s2, %s924_s20  ;;  %p931_p11 = scmp.lt.u32.totalorder %s924_s20, %s1572_s2 }
  0x18   : > { %p927_p9 = pnand %p1281_p8, %p925_p7 }
  0x1a   : > { %p928_p10 = pneg %p927_p9 }
  0x1c   : > { %p933_p12 = pnand %p931_p11, %p928_p10 }
  0x1e   : > { %936 = shalt.err (!%p933_p12)
}
  0x1f   : > { %s937_s26 = scalar_lea.vmem %s1255_s10, 128  ;;  %p945_p5 = scmp.lt.s32.totalorder %s1255_s10, %s1255_s10 }
  0x20   : > { %p938_p13 = scmp.ne.s32.totalorder %s1255_s10, %s937_s26  ;;  %p946_p3 = scmp.lt.s32.totalorder %s937_s26, %s937_s26 }
  0x22   : > { %p940_p0 = pnand %p938_p13, %p1281_p8  ;;  %p947_p7 = por %p946_p3, %p945_p5 }
  0x24   : > { %p941_p2 = pneg %p940_p0 }
  0x26   : > { %p948_p9 = pnand %p947_p7, %p941_p2 }
  0x28   : > { %951 = shalt.err (!%p948_p9)
}
  0x29   : > { %s1175_s9 = smov 64   ;;  %s1176_s13 = smov 4  }
  0x2a   : > { %843 = dma.hbm_to_vmem [thread:$0]  (!%p1265_p6), %s1572_s2, 128, %s1255_s10, [#allocation7], %s1175_s9, %s1175_s9, %s1176_s13  }
  0x2b   : > { %s952_s21 = scalar_lea.hbm %s1560_s4, 16 }
  0x2c   : > { %p953_p3 = scmp.ne.s32.totalorder %s1560_s4, %s952_s21  ;;  %p959_p12 = scmp.lt.u32.totalorder %s952_s21, %s1560_s4 }
  0x2e   : > { %p955_p10 = pnand %p953_p3, %p1281_p8 }
  0x30   : > { %p956_p11 = pneg %p955_p10 }
  0x32   : > { %p961_p13 = pnand %p959_p12, %p956_p11 }
  0x34   : > { %964 = shalt.err (!%p961_p13)
}
  0x35   : > { %s965_s10 = scalar_lea.vmem %s1269_s14, 16  ;;  %s972_s16 = scalar_lea.vmem %s1269_s14, 32 }
  0x36   : > { %p966_p0 = scmp.ne.s32.totalorder %s1269_s14, %s965_s10  ;;  %p973_p7 = scmp.lt.s32.totalorder %s1269_s14, %s1269_s14 }
  0x37   : > { %p974_p9 = scmp.lt.s32.totalorder %s972_s16, %s965_s10 }
  0x38   : > { %p968_p2 = pnand %p966_p0, %p1281_p8 }
  0x39   : > { %p975_p3 = por %p974_p9, %p973_p7 }
  0x3a   : > { %p969_p5 = pneg %p968_p2 }
  0x3c   : > { %p976_p10 = pnand %p975_p3, %p969_p5 }
  0x3e   : > { %979 = shalt.err (!%p976_p10)
}
  0x3f   : > { %849 = dma.hbm_to_vmem [thread:$0]  (!%p1265_p6), %s1560_s4, 16, %s1269_s14, [#allocation10]  }
  0x40   : > { %s980_s22 = scalar_lea.hbm %s1559_s3, 256 }
  0x41   : > { %p981_p11 = scmp.ne.s32.totalorder %s1559_s3, %s980_s22  ;;  %p987_p0 = scmp.lt.u32.totalorder %s980_s22, %s1559_s3 }
  0x43   : > { %p983_p12 = pnand %p981_p11, %p1281_p8 }
  0x45   : > { %p984_p13 = pneg %p983_p12 }
  0x47   : > { %p989_p2 = pnand %p987_p0, %p984_p13 }
  0x49   : > { %992 = shalt.err (!%p989_p2)
}
  0x4a   : > { %s993_s14 = scalar_lea.vmem %s1271_s17, 256  ;;  %p1001_p3 = scmp.lt.s32.totalorder %s1271_s17, %s1271_s17 }
  0x4b   : > { %p994_p5 = scmp.ne.s32.totalorder %s1271_s17, %s993_s14  ;;  %p1002_p10 = scmp.lt.s32.totalorder %s993_s14, %s993_s14 }
  0x4d   : > { %p996_p7 = pnand %p994_p5, %p1281_p8  ;;  %p1003_p11 = por %p1002_p10, %p1001_p3 }
  0x4f   : > { %p997_p9 = pneg %p996_p7 }
  0x51   : > { %p1004_p12 = pnand %p1003_p11, %p997_p9 }
  0x53   : > { %1007 = shalt.err (!%p1004_p12)
}
  0x54   : > { %846 = dma.hbm_to_vmem [thread:$0]  (!%p1265_p6), %s1559_s3, 256, %s1271_s17, [#allocation7], %s1175_s9, %s1175_s9, %s1176_s13  }
  0x55   : > { %s1177_s19 = smov [#allocation11]   ;;  %s1008_s24 = scalar_lea.hbm %s1562_s6, 16 }
  0x56   : > { %s288_s20 = sshll.u32 %s1177_s19, 4  ;;  %p1009_p13 = scmp.ne.s32.totalorder %s1562_s6, %s1008_s24  ;;  %s289_s20 = int_to_ptr.vmem [resolvable:$true] %s288_s20 }
  0x57   : > { %p1015_p5 = scmp.lt.u32.totalorder %s1008_s24, %s1562_s6 }
  0x58   : > { %p1011_p0 = pnand %p1009_p13, %p1281_p8 }
  0x5a   : > { %p1012_p2 = pneg %p1011_p0 }
  0x5c   : > { %p1017_p7 = pnand %p1015_p5, %p1012_p2 }
  0x5e   : > { %1020 = shalt.err (!%p1017_p7)
}
  0x5f   : > { %s1021_s17 = scalar_lea.vmem %s289_s20, 16  ;;  %s1028_s9 = scalar_lea.vmem %s289_s20, 32 }
  0x60   : > { %p1022_p9 = scmp.ne.s32.totalorder %s289_s20, %s1021_s17  ;;  %p1029_p11 = scmp.lt.s32.totalorder %s289_s20, %s289_s20 }
  0x61   : > { %p1030_p12 = scmp.lt.s32.totalorder %s1028_s9, %s1021_s17 }
  0x62   : > { %p1024_p3 = pnand %p1022_p9, %p1281_p8 }
  0x63   : > { %p1031_p1 = por %p1030_p12, %p1029_p11 }
  0x64   : > { %p1025_p10 = pneg %p1024_p3 }
  0x66   : > { %p1032_p4 = pnand %p1031_p1, %p1025_p10 }
  0x68   : > { %1035 = shalt.err (!%p1032_p4)
}
  0x69   : > { %852 = dma.hbm_to_vmem [thread:$0]  (!%p1265_p6), %s1562_s6, 16, %s289_s20, [#allocation10]  }
  0x6a   : > { %s748_s15 = sadd.s32 4294967294, %s1170_s30   ;;  %s1375_s23 = sadd.s32 1, %s1170_s30  }
  0x6b   : > { %s32_s18 = ssub.s32 %s1170_s30, %s1375_s23  ;;  %s35_s19 = sadd.s32 1, %s1166_s29 }
  0x6c   : > { %p33_p1 = scmp.eq.s32.totalorder %s32_s18, 0  ;;  %p42_p4 = scmp.ne.s32.totalorder %s1166_s29, %s1162_s28 }
  0x6d   : > { %p43_p8 = scmp.eq.s32.totalorder %s1170_s30, 0  ;;  %p48_p13 = scmp.ne.s32.totalorder %s1162_s28, %s1158_s27 }
  0x6e   : > { %s1386_s21 = scalar_select %p33_p1, %s1166_s29, %s35_s19  }
  0x6f   : > { %p1388_p0 = por %p43_p8, %p42_p4  ;;  %p1575_p2 = scmp.eq.s32.totalorder %s1249_s11, 0 }
  0x70   : > { %p1567_p5 = scmp.eq.s32.totalorder %s1249_s11, 7  ;;  %p204_p7 = scmp.eq.s32.totalorder %s748_s15, 7 }
  0x71   : > { %p1394_p6 = por %p1575_p2, %p48_p13  ;;  %p865_p9 = scmp.lt.s32.totalorder %s1170_s30, 8 }
  0x72   : > { %s299_s24 = sand.u32 1, %s1166_s29   ;;  %p1403_p3 = por %p1567_p5, %p42_p4 }
  0x73   : > { %p1407_p10 = por %p204_p7, %p48_p13  ;;  %s755_s10 = sshll.u32 %s299_s24, 1 }
  0x74   : > { %s1577_s25 = scalar_select %p1403_p3, 1, 0 }
  0x75   : > { %s1578_s26 = scalar_select %p1407_p10, 1, 0 }
  0x76   : > { %s756_s14 = sshll.u32 %s1170_s30, 5  ;;  %s303_s16 = scalar_lea.vmem [#allocation3], %s755_s10 }
  0x77   : > { %s1415_s13 = scalar_lea.hbm %s1556_s0, %s756_s14  ;;  %s310_s15 = sshll.u32 %s303_s16, 4  ;;  %s1417_s15 = int_to_ptr.vmem [resolvable:$true] %s310_s15 }
  0x78   : > { %p1421_p11 = pnand %p865_p9, %p1388_p0  ;;  %s300_s19 = scalar_lea.sflag [#allocation4], %s299_s24 }
  0x79   : > { %s1036_s2 = scalar_lea.hbm %s1415_s13, 32  ;;  %s1041_s17 = scalar_lea.hbm %s1556_s0, 256 }
  0x7a   : > { %p1037_p12 = scmp.ne.s32.totalorder %s1415_s13, %s1036_s2  ;;  %p1038_p1 = pneg %p1421_p11 }
  0x7b   : > { %p1042_p13 = scmp.lt.u32.totalorder %s1415_s13, %s1556_s0  ;;  %p1043_p0 = scmp.lt.u32.totalorder %s1041_s17, %s1036_s2 }
  0x7c   : > { %p1039_p4 = pnand %p1038_p1, %p1037_p12  ;;  %p1045_p7 = scmp.lt.u32.totalorder %s1036_s2, %s1415_s13 }
  0x7d   : > { %p1044_p2 = por %p1043_p0, %p1042_p13 }
  0x7e   : > { %p1040_p8 = pneg %p1039_p4 }
  0x7f   : > { %p1046_p9 = por %p1045_p7, %p1044_p2 }
  0x81   : > { %p1047_p5 = pnand %p1046_p9, %p1040_p8 }
  0x83   : > { %1050 = shalt.err (!%p1047_p5)
}
  0x84   : > { %s1051_s24 = scalar_lea.vmem %s1417_s15, 32  ;;  %s1178_s16 = smov [#allocation3]  }
  0x85   : > { %p1052_p12 = scmp.ne.s32.totalorder %s1417_s15, %s1051_s24  ;;  %s1056_s10 = sshll.u32 %s1178_s16, 4  ;;  %s1057_s10 = int_to_ptr.vmem [resolvable:$false] %s1056_s10 }
  0x86   : > { %s1058_s14 = scalar_lea.vmem %s1057_s10, 64  ;;  %p1059_p3 = scmp.lt.s32.totalorder %s1417_s15, %s1057_s10 }
  0x87   : > { %p1054_p4 = pnand %p1052_p12, %p1038_p1  ;;  %p1060_p13 = scmp.lt.s32.totalorder %s1058_s14, %s1051_s24 }
  0x89   : > { %p1055_p10 = pneg %p1054_p4  ;;  %p1061_p0 = por %p1060_p13, %p1059_p3 }
  0x8b   : > { %p1062_p2 = pnand %p1061_p0, %p1055_p10 }
  0x8d   : > { %1065 = shalt.err (!%p1062_p2)
}
  0x8e   : > { %856 = dma.hbm_to_vmem [thread:$0]  (!%p1421_p11), %s1415_s13, 32, %s1417_s15, %s300_s19  }
  0x8f   : > { %p1580_p5 = scmp.ne.s32.totalorder %s1570_s12, 0 }
  0x90   : > { %s1453_s2 = sand.u32 (!%p1580_p5), 1, %s1162_s28  }
  0x91   : > { %319 = sbr.rel (%p1580_p5) target bundleno = 979 (0x3d3), region = 48  ;;  %s758_s17 = sshll.u32 (!%p1580_p5), %s1453_s2, 1 }
  0x92   : > { %s322_s22 = scalar_lea.sflag (!%p1580_p5), [#allocation4], %s1453_s2  ;;  %s325_s9 = scalar_lea.vmem (!%p1580_p5), [#allocation3], %s758_s17 }
  0x98   : > { %1137 = dma.done.wait (%p1394_p6), %s322_s22, 32  }
  0x99   : > { %1139 = vsyncadd (%p1394_p6), %s322_s22, 4294967264  ;;  %p1581_p3 = scmp.eq.s32.totalorder %s1249_s11, 0 }
  0x9b   : > { %1141 = dma.done.wait (%p1581_p3), [#allocation7], 384   ;;  %p1582_p10 = pmov %p1581_p3 }
  0x9c   : > { %p1583_p11 = pmov %p1581_p3 }
  0x9d   : > { %1143 = vsyncadd (%p1582_p10), [#allocation7], 4294966912 }
  0x9e   : > { %1145 = dma.done.wait (%p1583_p11), [#allocation10], 32   ;;  %p1584_p1 = pmov %p1581_p3 }
  0x9f   : > { %s1469_s12 = scalar_lea.vmem [#allocation12], %s758_s17  ;;  %p1585_p8 = scmp.ne.s32.totalorder %s1249_s11, 0 }
  0xa0   : > { %1147 = vsyncadd (%p1584_p1), [#allocation10], 4294967264  ;;  %v379_v0 = vld [vmem:[%s1557_s1] sm:$0x3] (!%p1585_p8)  ;;  %vm380_vm0 = vcmask (!%p1585_p8), 254976  }
  0xa1   : > { %378 = sbr.rel (%p1585_p8) target bundleno = 168 (0xa8), region = 72  ;;  %381 = vst.msk [vmem:[#allocation2] sm:$0x3] (!%p1585_p8), %vm380_vm0, %v379_v0 }
  0xa8 PF: > { %v914_v1 = vld [vmem:[#allocation8] sm:$0xff]   ;;  %v1179_v2 = vmov 0.0   ;;  %v915_v3 = vld [vmem:[#allocation6] sm:$0xff]   ;;  %vm1180_vm1 = vmmov 0   ;;  %v916_v4 = vld [vmem:[#allocation8 + $0x8] sm:$0xff]   ;;  %vm454_vm2 = vcmask 130048  }
  0xa9   : > { %792 = vmatprep.subr.bf16.mxu0 %v1179_v2  ;;  %800 = vmatprep.subr.bf16.mxu1 %v1179_v2  ;;  %v382_v5 = vld [vmem:[%s325_s9] sm:$0x3]  ;;  %v384_v6 = vld [vmem:[#allocation2] sm:$0x3]  ;;  %v917_v7 = vld [vmem:[%s1561_s5] sm:$0xff]   ;;  %vm404_vm3 = vcmask 261120  }
  0xaa   : > { %793 = vmatpush3.bf16.msra.mxu0 %v914_v1  ;;  %802 = vmatprep.mubr.msk.bf16.mxu1 %vm1180_vm1, %v1179_v2  ;;  %v383_v8 = vpack.c.bf16 %v382_v5, %v382_v5  ;;  %v385_v9 = vpack.c.bf16 %v384_v6, %v384_v6  ;;  %v918_v10 = vld [vmem:[%s1561_s5 + $0x8] sm:$0xff]   ;;  %v919_v11 = vld [vmem:[%s1561_s5 + $0x10] ss:$0 sps:$4 sm:$0xff]   ;;  %vm538_vm4 = vcmask 1043456   ;;  %v770_v17 = vld [vmem:[#allocation9] ss:$0 sm:$0xff] }
  0xab   : > { %801 = vmatpush3.bf16.msra.mxu1 %v915_v3  ;;  %794 = vmatprep.subr.bf16.mxu0 %v1179_v2  ;;  %v540_v12 = vsel %vm538_vm4, %v919_v11, 0  ;;  %vm596_vm5 = vcmask 254976   ;;  %vm534_vm6 = vcmask 326656   ;;  %v771_v25 = vld [vmem:[#allocation11] ss:$0 sm:$0xff]  ;;  %vm582_vm7 = vcmask 1041408  }
  0xac   : > { %796 = vmatprep.mubr.msk.bf16.mxu0 %vm1180_vm1, %v1179_v2  ;;  %806 = vmatprep.subr.bf16.mxu1 %v1179_v2  ;;  %p776_p6 = scmp.ne.s32.totalorder %s1249_s11, 7 }
  0xae   : > { %795 = vmatpush3.bf16.msra.mxu0 %v916_v4  ;;  %803 = vmatmul.mubr.msk.bf16.vlgmr.msra.gmra.mrb[0].mxu1 %vm454_vm2, %v383_v8 }
  0xaf   : > { %807 = vmatpush3.bf16.msra.mxu1 %v917_v7  ;;  %812 = vmatprep.mubr.msk.bf16.mxu1 %vm1180_vm1, %v1179_v2 }
  0xb0   : > { %808 = vmatprep.subr.bf16.mxu1 %v1179_v2 }
  0xb1   : > { %797 = vmatmul.mubr.msk.bf16.vlgmr.msra.gmra.mrb[0].mxu0 %vm404_vm3, %v385_v9 }
  0xb3   : > { %809 = vmatpush3.bf16.msra.mxu1 %v918_v10 }
  0xb4   : > { %810 = vmatprep.subr.bf16.mxu1 %v1179_v2 }
  0xb7   : > { %811 = vmatpush3.bf16.msra.mxu1 %v540_v12 }
 0x181   : > { %v492_v13 = vpop.f32.mrb[0].mxu1 }
 0x182   : > { %v804_v14 = vpop.f32.mrb[1].mxu1 }
 0x183   : > { %v495_v15 = vpop.f32.mrb[2].mxu1 }
 0x184   : > { %v442_v16 = vpop.f32.mrb[0].mxu0  ;;  %v805_v18 = vpop.f32.mrb[3].mxu1 }
 0x185   : > { %v493_v19 = vadd.f32 %v492_v13, %v442_v16  ;;  %v798_v20 = vpop.f32.mrb[1].mxu0 }
 0x186   : > { %v445_v21 = vpop.f32.mrb[2].mxu0 }
 0x187   : > { %v505_v22 = vadd.f32 %v770_v17, %v493_v19  ;;  %v799_v23 = vpop.f32.mrb[3].mxu0 }
 0x189   : > { %v506_v24 = vpack.c.bf16 %v505_v22, %v505_v22  ;;  %597 = vst.msk [vmem:[#allocation2] sm:$0x3] %vm596_vm5, %v505_v22 }
 0x18b   : > { %813 = vmatmul.mubr.msk.bf16.vlgmr.msra.gmra.mrb[4].mxu1 %vm534_vm6, %v506_v24 }
 0x190   : > { %v602_v41 = vld [vmem:[#allocation2] sm:$0x3] (!%p776_p6) }
 0x191   : > { %603 = vst.msk [vmem:[#allocation13] sm:$0x3] (!%p776_p6), %vm596_vm5, %v602_v41 }
 0x25e   : > { %v576_v26 = vpop.f32.mrb[4].mxu1 }
 0x25f   : > { %v577_v27 = vadd.f32 %v771_v25, %v576_v26  ;;  %v814_v28 = vpop.f32.mrb[5].mxu1 }
 0x260   : > { %v579_v29 = vpop.f32.mrb[6].mxu1 }
 0x261   : > { %v815_v30 = vpop.f32.mrb[7].mxu1  ;;  %v583_v31 = vsel %vm582_vm7, %v577_v27, -inf }
 0x262   : > { %584 = vmax.xlane.f32.xlu0 %v583_v31 }
 0x2ef   : > { %v585_v32 = vpop.xlane.xlu0 %584 }
 0x2f0   : > { %v586_v33 = vsub.f32 %v577_v27, %v585_v32 }
 0x2f2   : > { %v587_v34 = vmul.f32 1.442695, %v586_v33 }
 0x2f4   : > { %920 = vpow2.f32 %v587_v34 }
 0x2fe   : > { %v921_v35 = vpop.eup %920 }
 0x2ff   : > { %v589_v36 = vsel %vm582_vm7, %v921_v35, 0.0 }
 0x300   : > { %590 = vadd.xlane.f32.xlu0 %v589_v36 }
 0x38d   : > { %v591_v37 = vpop.xlane.xlu0 %590 }
 0x38e   : > { %922 = vlog2.f32 %v591_v37 }
 0x397   : > { %601 = sbr.rel (%p776_p6) target bundleno = 926 (0x39e), region = 76 }
 0x398   : > { %v923_v38 = vpop.eup %922 }
 0x399   : > { %v593_v39 = vmul.f32 0.6931472, %v923_v38 }
 0x39b   : > { %v594_v40 = vsub.f32 %v586_v33, %v593_v39 }
 0x39d   : > { %595 = vst [vmem:[%s1469_s12] sm:$0x3] %v594_v40 }
 0x39e PF: > { %s778_s14 = sshll.u32 %s1249_s11, 5  ;;  %s618_s13 = sshll.u32 %s1469_s12, 4  ;;  %s619_s13 = int_to_ptr.vmem [resolvable:$true] %s618_s13 }
 0x39f   : > { %s1496_s9 = scalar_lea.hbm %s1563_s7, %s778_s14  ;;  %s605_s20 = scalar_lea.sflag [#allocation5], %s1453_s2 }
 0x3a0   : > { %s1066_s15 = scalar_lea.vmem %s619_s13, 32  ;;  %p1586_p9 = scmp.ne.s32.totalorder %s1577_s25, 0 }
 0x3a1   : > { %p1067_p7 = scmp.ne.s32.totalorder %s619_s13, %s1066_s15  ;;  %s1181_s18 = smov [#allocation12]  }
 0x3a2   : > { %s1070_s19 = sshll.u32 %s1181_s18, 4  ;;  %s1071_s19 = int_to_ptr.vmem [resolvable:$false] %s1070_s19 }
 0x3a3   : > { %p1068_p12 = pnand %p1067_p7, %p1586_p9  ;;  %s1072_s24 = scalar_lea.vmem %s1071_s19, 64 }
 0x3a4   : > { %p1073_p13 = scmp.lt.s32.totalorder %s619_s13, %s1071_s19  ;;  %p1074_p0 = scmp.lt.s32.totalorder %s1072_s24, %s1066_s15 }
 0x3a5   : > { %p1069_p4 = pneg %p1068_p12 }
 0x3a6   : > { %p1075_p2 = por %p1074_p0, %p1073_p13 }
 0x3a8   : > { %p1076_p5 = pnand %p1075_p2, %p1069_p4 }
 0x3aa   : > { %1079 = shalt.err (!%p1076_p5)
}
 0x3ab   : > { %s1080_s2 = scalar_lea.hbm %s1496_s9, 32  ;;  %s1084_s10 = scalar_lea.hbm %s1563_s7, 256 }
 0x3ac   : > { %p1081_p3 = scmp.ne.s32.totalorder %s1496_s9, %s1080_s2  ;;  %p1085_p1 = scmp.lt.u32.totalorder %s1496_s9, %s1563_s7 }
 0x3ad   : > { %p1086_p8 = scmp.lt.u32.totalorder %s1084_s10, %s1080_s2  ;;  %p1088_p7 = scmp.lt.u32.totalorder %s1080_s2, %s1496_s9 }
 0x3ae   : > { %p1082_p10 = pnand %p1081_p3, %p1586_p9 }
 0x3af   : > { %p1087_p6 = por %p1086_p8, %p1085_p1 }
 0x3b0   : > { %p1083_p11 = pneg %p1082_p10 }
 0x3b1   : > { %p1089_p12 = por %p1088_p7, %p1087_p6 }
 0x3b3   : > { %p1090_p4 = pnand %p1089_p12, %p1083_p11 }
 0x3b5   : > { %1093 = shalt.err (!%p1090_p4)
}
 0x3b6   : > { %834 = dma.vmem_to_hbm [thread:$0]  (%p1586_p9), %s619_s13, 32, %s1496_s9, %s605_s20  }
 0x3b7   : > { %s1182_s22 = smov [#allocation13]   ;;  %p1587_p0 = scmp.eq.s32.totalorder %s1249_s11, 7 }
 0x3b8   : > { %s629_s15 = sshll.u32 %s1182_s22, 4  ;;  %s630_s15 = int_to_ptr.vmem [resolvable:$true] %s629_s15 }
 0x3b9   : > { %s1094_s18 = scalar_lea.vmem %s630_s15, 32  ;;  %p1101_p3 = scmp.lt.s32.totalorder %s630_s15, %s630_s15 }
 0x3ba   : > { %p1095_p13 = scmp.ne.s32.totalorder %s630_s15, %s1094_s18  ;;  %p1102_p10 = scmp.lt.s32.totalorder %s1094_s18, %s1094_s18 }
 0x3bc   : > { %p1096_p2 = pnand %p1095_p13, %p1587_p0  ;;  %p1103_p1 = por %p1102_p10, %p1101_p3 }
 0x3be   : > { %p1097_p5 = pneg %p1096_p2 }
 0x3c0   : > { %p1104_p8 = pnand %p1103_p1, %p1097_p5 }
 0x3c2   : > { %1107 = shalt.err (!%p1104_p8)
}
 0x3c3   : > { %s1108_s25 = scalar_lea.hbm %s1564_s8, 32  ;;  %p1588_p11 = pmov %p1587_p0 }
 0x3c4   : > { %p1109_p9 = scmp.ne.s32.totalorder %s1564_s8, %s1108_s25  ;;  %p1114_p12 = scmp.lt.u32.totalorder %s1108_s25, %s1564_s8 }
 0x3c6   : > { %p1110_p6 = pnand %p1109_p9, %p1588_p11 }
 0x3c8   : > { %p1111_p7 = pneg %p1110_p6 }
 0x3ca   : > { %p1116_p4 = pnand %p1114_p12, %p1111_p7 }
 0x3cc   : > { %1119 = shalt.err (!%p1116_p4)
}
 0x3cd   : > { %p1589_p13 = pmov %p1587_p0 }
 0x3cf   : > { %836 = dma.vmem_to_hbm [thread:$0]  (%p1589_p13), %s630_s15, 32, %s1564_s8, [#allocation14]  }
 0x3d0   : > { %1149 = dma.done.wait (%p1587_p0), [#allocation14], 32   ;;  %p1590_p2 = pmov %p1587_p0 }
 0x3d2   : > { %1151 = vsyncadd (%p1590_p2), [#allocation14], 4294967264 }
 0x3d3 PF: > { %p872_p5 = scmp.ge.s32.totalorder %s1170_s30, 2  ;;  %s645_s10 = sand.u32 1, %s1158_s27  }
 0x3d4   : > { %p1591_p3 = scmp.ne.s32.totalorder %s1578_s26, 0  ;;  %s646_s14 = scalar_lea.sflag [#allocation5], %s645_s10 }
 0x3d6   : > { %p858_p10 = pnand %p872_p5, %p1591_p3 }
 0x3d8   : > { %1153 = dma.done.wait (!%p858_p10), %s646_s14, 32  }
 0x3d9   : > { %1155 = vsyncadd (!%p858_p10), %s646_s14, 4294967264  ;;  %p25_p1 = scmp.ge.s32.totalorder %s1375_s23, 10   ;;  %s1592_s27 = smov %s1162_s28 }
 0x3da   : > { %s1593_s28 = smov %s1166_s29  ;;  %s1594_s29 = smov %s1386_s21 }
 0x3db   : > { %s1595_s30 = smov %s1375_s23  ;;  %27 = sbr.rel (!%p25_p1) target bundleno = 10 (0xa), region = 125 }
 0x3e2   :  { %651 = vsyncpa [#allocation4], 1 }
 0x3e3   :  { %653 = vsyncpa [#allocation4 + $0x1], 1 }
 0x3e4   :  { %654 = vsyncpa [#allocation7], 1 }
 0x3e5   :  { %655 = vsyncpa [#allocation10], 1 }
 0x3e6   :  { %656 = vsyncpa [#allocation5], 1 }
 0x3e7   :  { %658 = vsyncpa [#allocation5 + $0x1], 1 }
 0x3e8   :  { %659 = vsyncpa [#allocation14], 1 }

</bundles_post_ra>
